<compile_context>
chip_gen: v7x
topology: tpu7x:2x2x1
jax: 0.10.0
libtpu: 0.0.40
codegen_flags: <defaults>
</compile_context>

<pallas_src>
import math

import jax
import jax.numpy as jnp
from jax.experimental import pallas as pl
from jax.experimental.pallas import tpu as pltpu


_LANE = 128
_SUBLANE = 8
_MAX_COL_TILE = 32768                   # lanes per block (multiple of 128)
_TARGET_BLOCK_BYTES = 6 * 1024 * 1024   # per-block bytes; amortizes per-step overhead
_VMEM_LIMIT_FLOOR = 32 * 1024 * 1024
_VMEM_LIMIT_CAP = 48 * 1024 * 1024      # safe on v5e/v6e (128 MiB phys) and v7x (64 MiB)
_FAST_PATH_BYTES = 256 * 1024           # below this, a fused XLA add beats a kernel launch


def _add_pos_kernel(seqs_ref, table_ref, out_ref):
    """Elementwise add of the positional table to one (Bt, Ct) slab.

    seqs_ref  : VMEM (Bt, Ct) input block, any float dtype.
    table_ref : VMEM (1, Ct) or (Bt, Ct) float32 positional-encoding block;
                broadcasts over the batch-row (sublane) axis when (1, Ct).
    out_ref   : VMEM (Bt, Ct) output block, same dtype as the input.
    """
    out_ref[...] = (seqs_ref[...].astype(jnp.float32) + table_ref[...]).astype(
        out_ref.dtype
    )


def _build_freq_table(num_positions: int, encoding_dim: int, start: int = 0):
    """fairseq2-style sinusoidal table: first E/2 channels sin, second E/2 cos."""
    num_sin = encoding_dim // 2
    inv_freq = jnp.exp(
        jnp.arange(num_sin, dtype=jnp.float32) * -(math.log(10000.0) / num_sin)
    )  # (E/2,)
    pos = jnp.arange(start, start + num_positions, dtype=jnp.float32)  # (P,)
    args = pos[:, None] * inv_freq[None, :]  # (P, E/2)
    return jnp.concatenate([jnp.sin(args), jnp.cos(args)], axis=-1)  # (P, E) f32


def _col_tile(cols: int) -> int:
    """Column tile: full extent when small, else a fixed multiple of 128.

    Ragged last blocks are handled by Pallas (pl.cdiv grid), so no divisor
    search / full-extent fallback is needed.
    """
    if cols <= _MAX_COL_TILE:
        return cols
    return _MAX_COL_TILE


def _row_tile(rows: int, ct: int, itemsize: int) -> int:
    """Row tile: multiple of 8 sized so one block is ~_TARGET_BLOCK_BYTES."""
    bytes_per_group = _SUBLANE * ct * itemsize
    groups = max(1, _TARGET_BLOCK_BYTES // max(1, bytes_per_group))
    bt = int(groups) * _SUBLANE
    if bt >= rows:
        return rows  # full extent is always a legal block dim
    return bt


class SinusoidalPositionEncoder:
    """JAX/Pallas equivalent of fairseq2 SinusoidalPositionEncoder
    (the canonical concrete PositionEncoder subclass)."""

    def __init__(self, encoding_dim: int, max_seq_len,
                 *, min_pallas_bytes: int = _FAST_PATH_BYTES):
        if encoding_dim % 2 != 0:
            raise ValueError(
                f"`encoding_dim` must be even, but is {encoding_dim} instead."
            )
        self.encoding_dim = encoding_dim
        self.max_seq_len = max_seq_len
        self.min_pallas_bytes = min_pallas_bytes

        # Non-learned buffer, built once at init (like fairseq2 reset_parameters).
        if max_seq_len is not None:
            self.freqs = _build_freq_table(max_seq_len, encoding_dim)  # (L, E) f32
        else:
            self.freqs = None

    def __call__(self, seqs, padding_mask=None, *, start_step: int = 0):
        *batch_dims, s, e = seqs.shape
        if e != self.encoding_dim:
            raise ValueError(
                f"last dim of `seqs` must be {self.encoding_dim}, got {e}."
            )

        # PositionEncoder.forward bound check (start_step plays the state_bag role).
        if self.max_seq_len is not None and isinstance(start_step, int):
            seq_len = start_step + s
            if seq_len > self.max_seq_len:
                raise ValueError(
                    f"The input sequence length must be less than or equal to the "
                    f"maximum sequence length ({self.max_seq_len}), but is "
                    f"{seq_len} instead."
                )
        # Like fairseq2's sinusoidal encoder, padding_mask is not consumed here.

        # Current-window table (S, E) f32.  Static slice when start_step is a
        # Python int (free under XLA); dynamic slice only for traced offsets.
        if self.freqs is not None:
            if isinstance(start_step, int):
                table = self.freqs[start_step:start_step + s]
            else:
                table = jax.lax.dynamic_slice_in_dim(self.freqs, start_step, s, axis=0)
        else:
            table = _build_freq_table(s, e, start=start_step)

        rows = int(math.prod(batch_dims)) if batch_dims else 1
        cols = s * e
        itemsize = jnp.dtype(seqs.dtype).itemsize

        # Fast path: tiny (decode-step) inputs — Pallas dispatch + pipeline
        # prologue dominates a few-KB add, so let XLA fuse it.
        if rows * cols * itemsize < self.min_pallas_bytes:
            return (seqs.astype(jnp.float32) + table).astype(seqs.dtype)

        # Lane-dense 2-D view: rows = flattened batch dims, cols = S*E.
        seqs2d = seqs.reshape(rows, cols)
        table2d = table.reshape(1, cols).astype(jnp.float32)

        # Single batch row: fold into 8 sublanes so DMA descriptors and stores
        # are full-width.  At rows == 1 the table is the same size as the
        # input, so dropping the broadcast costs no extra HBM traffic.
        broadcast_table = True
        if rows == 1 and cols % (_SUBLANE * _LANE) == 0:
            rows, cols = _SUBLANE, cols // _SUBLANE
            seqs2d = seqs2d.reshape(rows, cols)
            table2d = table2d.reshape(rows, cols)
            broadcast_table = False

        ct = _col_tile(cols)
        bt = _row_tile(rows, ct, itemsize)

        # Column-tile axis OUTER, row-tile axis INNER: the table block index
        # (0, j) is constant across the inner loop, so Pallas skips re-DMA.
        grid = (pl.cdiv(cols, ct), pl.cdiv(rows, bt))

        table_block_rows = 1 if broadcast_table else bt
        vmem_bytes = 2 * (2 * bt * ct * itemsize + table_block_rows * ct * 4)
        vmem_limit = int(min(_VMEM_LIMIT_CAP,
                             max(_VMEM_LIMIT_FLOOR, vmem_bytes * 3 // 2)))

        if broadcast_table:
            table_spec = pl.BlockSpec((1, ct), lambda j, i: (0, j))
        else:
            table_spec = pl.BlockSpec((bt, ct), lambda j, i: (i, j))

        out2d = pl.pallas_call(
            _add_pos_kernel,
            out_shape=jax.ShapeDtypeStruct((rows, cols), seqs.dtype),
            grid=grid,
            in_specs=[
                pl.BlockSpec((bt, ct), lambda j, i: (i, j)),  # seqs slab
                table_spec,                                   # positional table
            ],
            out_specs=pl.BlockSpec((bt, ct), lambda j, i: (i, j)),
            compiler_params=pltpu.CompilerParams(
                dimension_semantics=("parallel", "parallel"),
                vmem_limit_bytes=vmem_limit,
            ),
        )(seqs2d, table2d)

        return out2d.reshape(seqs.shape)


def _reference(seqs, encoding_dim, start_step=0):
    """Pure-JAX reference matching fairseq2's sinusoidal table construction."""
    s = seqs.shape[-2]
    table = _build_freq_table(s, encoding_dim, start=start_step)  # (S, E)
    return (seqs.astype(jnp.float32) + table).astype(seqs.dtype)


if __name__ == "__main__":
    E = 32
    MAX_SEQ_LEN = 64

    key = jax.random.PRNGKey(0)
    k1, k2, k3 = jax.random.split(key, 3)

    # Encoder that forces the Pallas path even at tiny demo shapes.
    enc = SinusoidalPositionEncoder(encoding_dim=E, max_seq_len=MAX_SEQ_LEN,
                                    min_pallas_bytes=0)

    # Case 1: batched (2, 8, 32) with an incremental-decoding offset.
    seqs = jax.random.normal(k1, (2, 8, E), dtype=jnp.float32)
    out = jax.block_until_ready(enc(seqs, padding_mask=None, start_step=3))
    ref = _reference(seqs, E, start_step=3)
    assert out.shape == seqs.shape and out.dtype == seqs.dtype
    assert jnp.allclose(out, ref, atol=1e-5, rtol=1e-5), "mismatch (batched)"

    # Case 2: single batch row (1, 32, 32) — exercises the sublane-fold path.
    seqs1 = jax.random.normal(k2, (1, 32, E), dtype=jnp.float32)
    out1 = jax.block_until_ready(enc(seqs1, padding_mask=None, start_step=0))
    ref1 = _reference(seqs1, E, start_step=0)
    assert jnp.allclose(out1, ref1, atol=1e-5, rtol=1e-5), "mismatch (single row)"

    # Case 3: default encoder, tiny decode step — takes the fused-XLA fast path.
    enc_fast = SinusoidalPositionEncoder(encoding_dim=E, max_seq_len=MAX_SEQ_LEN)
    seqs2 = jax.random.normal(k3, (2, 1, E), dtype=jnp.float32)
    out2 = jax.block_until_ready(enc_fast(seqs2, padding_mask=None, start_step=5))
    ref2 = _reference(seqs2, E, start_step=5)
    assert jnp.allclose(out2, ref2, atol=1e-5, rtol=1e-5), "mismatch (decode step)"

    print("KERNEL_OK")
</pallas_src>

<mosaic_0001>
module attributes {stable_mosaic.version = 11 : i64} {
  func.func @_add_pos_kernel(%arg0: i32, %arg1: i32, %arg2: memref<2x256xf32, #tpu.memory_space<vmem>>, %arg3: memref<1x256xf32, #tpu.memory_space<vmem>>, %arg4: memref<2x256xf32, #tpu.memory_space<vmem>>) attributes {dimension_semantics = [#tpu.dimension_semantics<parallel>, #tpu.dimension_semantics<parallel>], iteration_bounds = array<i64: 1, 1>, scalar_prefetch = 0 : i64, scratch_operands = 0 : i64, tpu.core_type = #tpu.core_type<tc>, window_params = [{transform_indices = @transform_0, window_bounds = array<i64: 2, 256>}, {transform_indices = @transform_1, window_bounds = array<i64: 1, 256>}, {transform_indices = @transform_2, window_bounds = array<i64: 2, 256>}]} {
    %c0 = arith.constant 0 : index
    %c0_0 = arith.constant 0 : index
    %0 = vector.load %arg2[%c0, %c0_0] : memref<2x256xf32, #tpu.memory_space<vmem>>, vector<2x256xf32>
    %c0_1 = arith.constant 0 : index
    %c0_2 = arith.constant 0 : index
    %1 = vector.load %arg3[%c0_1, %c0_2] : memref<1x256xf32, #tpu.memory_space<vmem>>, vector<1x256xf32>
    %2 = vector.broadcast %1 : vector<1x256xf32> to vector<2x256xf32>
    %3 = arith.addf %0, %2 : vector<2x256xf32>
    %c0_3 = arith.constant 0 : index
    %c0_4 = arith.constant 0 : index
    %4 = vector.load %arg4[%c0_3, %c0_4] : memref<2x256xf32, #tpu.memory_space<vmem>>, vector<2x256xf32>
    tpu.vector_store %arg4[%c0_3, %c0_4], %3 {strides = array<i32>} : memref<2x256xf32, #tpu.memory_space<vmem>>, vector<2x256xf32>,
    return
  }
  func.func @transform_0(%arg0: i32, %arg1: i32) -> (i32, i32) {
    %c0_i32 = arith.constant 0 : i32
    return %arg1, %arg0 : i32, i32
  }
  func.func @transform_1(%arg0: i32, %arg1: i32) -> (i32, i32) {
    %c0_i32 = arith.constant 0 : i32
    %c0_i32_0 = arith.constant 0 : i32
    return %c0_i32, %arg0 : i32, i32
  }
  func.func @transform_2(%arg0: i32, %arg1: i32) -> (i32, i32) {
    %c0_i32 = arith.constant 0 : i32
    return %arg1, %arg0 : i32, i32
  }
}

</mosaic_0001>

<bundles_post_ra>
// kernel: tpu_custom_call.1
= control target key start
LH: loop header
LB: loop body
LE: loop exit
PB: predicated region body
PF: predicated region fallthrough
CT: control target
= control target key end

     0   :  { %7 = vsyncpa [#allocation3], 0  ;;  %s157_s0 = inlined_call_operand.hbm [shape: f32[2,256], index: 0, kind: input, shape index: {}]   ;;  %s158_s1 = inlined_call_operand.vmem [shape: f32[1,256], index: 1, kind: input, shape index: {}]   ;;  %s159_s2 = inlined_call_operand.hbm [shape: f32[2,256], index: 2, kind: output, shape index: {}]  }
   0x1   :  { %8 = vsyncpa [#allocation4], 0  ;;  %s112_s9 = smov [#allocation2]   ;;  %s64_s13 = scalar_lea.hbm %s157_s0, 64 }
   0x2   :  { %s15_s10 = sshll.u32 %s112_s9, 4  ;;  %p65_p0 = scmp.ne.s32.totalorder %s157_s0, %s64_s13  ;;  %s16_s10 = int_to_ptr.vmem [resolvable:$true] %s15_s10 }
   0x3   :  { %p68_p1 = scmp.lt.u32.totalorder %s64_s13, %s157_s0 }
   0x5   :  { %p70_p2 = pnand %p68_p1, %p65_p0 }
   0x7   :  { %73 = shalt.err (!%p70_p2)
}
   0x8   :  { %s74_s18 = scalar_lea.vmem %s16_s10, 64  ;;  %p79_p4 = scmp.lt.s32.totalorder %s16_s10, %s16_s10 }
   0x9   :  { %p75_p3 = scmp.ne.s32.totalorder %s16_s10, %s74_s18  ;;  %p80_p5 = scmp.lt.s32.totalorder %s74_s18, %s74_s18 }
   0xb   :  { %p81_p6 = por %p80_p5, %p79_p4 }
   0xd   :  { %p82_p7 = pnand %p81_p6, %p75_p3 }
   0xf   :  { %85 = shalt.err (!%p82_p7)
}
  0x10   :  { %18 = dma.hbm_to_vmem [thread:$0]  %s157_s0, 64, %s16_s10, [#allocation3]  }
  0x11   :  { %108 = dma.done.wait [#allocation3], 64  }
  0x12   :  { %109 = vsyncadd [#allocation3], 4294967232  ;;  %v27_v0 = vlaneseq  ;;  %v113_v1 = vmov 1983009808   ;;  %v25_v7 = vld [vmem:[%s158_s1] sm:$0x3] }
  0x13   :  { %v37_v2 = vunpack.c.l.s4 %v113_v1  ;;  %v24_v12 = vld [vmem:[#allocation2] sm:$0xf]  ;;  %s114_s23 = smov [#allocation5]  }
  0x14   :  { %v28_v3 = vshrl.u32 %v27_v0, 7  ;;  %s52_s0 = sshll.u32 %s114_s23, 4  ;;  %s53_s0 = int_to_ptr.vmem [resolvable:$true] %s52_s0 }
  0x15   :  { %v38_v6 = vunpack.c.0.s8 %v37_v2  ;;  %s86_s24 = scalar_lea.vmem %s53_s0, 64  ;;  %p91_p9 = scmp.lt.s32.totalorder %s53_s0, %s53_s0 }
  0x16   :  { %v29_v4 = vsub.s32 0, %v28_v3  ;;  %v33_v5 = vsub.s32 1, %v28_v3  ;;  %p87_p8 = scmp.ne.s32.totalorder %s53_s0, %s86_s24  ;;  %p92_p10 = scmp.lt.s32.totalorder %s86_s24, %s86_s24 }
  0x17   :  { %v41_v10 = vsub.s32 %v38_v6, %v28_v3 }
  0x18   :  { %v30_v8 = vrot.slane %v25_v7, %v29_v4  ;;  %v34_v9 = vrot.slane %v25_v7, %v33_v5  ;;  %p93_p11 = por %p92_p10, %p91_p9 }
  0x1a   :  { %v35_v11 = vcombine.low %v30_v8, %v34_v9  ;;  %p94_p12 = pnand %p93_p11, %p87_p8 }
  0x1c   :  { %v42_v13 = vrot.slane %v35_v11, %v41_v10 }
  0x1e   :  { %v44_v14 = vadd.f32 %v42_v13, %v24_v12 }
  0x20   :  { %45 = vst [vmem:[#allocation5] sm:$0xf] %v44_v14 }
  0x21   :  { %97 = shalt.err (!%p94_p12)
}
  0x22   :  { %s98_s26 = scalar_lea.hbm %s159_s2, 64 }
  0x23   :  { %p99_p13 = scmp.ne.s32.totalorder %s159_s2, %s98_s26  ;;  %p102_p0 = scmp.lt.u32.totalorder %s98_s26, %s159_s2 }
  0x25   :  { %p104_p1 = pnand %p102_p0, %p99_p13 }
  0x27   :  { %107 = shalt.err (!%p104_p1)
}
  0x28   :  { %55 = dma.vmem_to_hbm [thread:$0]  %s53_s0, 64, %s159_s2, [#allocation4]  }
  0x29   :  { %110 = dma.done.wait [#allocation4], 64  }
  0x2a   :  { %111 = vsyncadd [#allocation4], 4294967232 }
  0x2b   :  { %59 = vsyncpa [#allocation3], 1 }
  0x2c   :  { %60 = vsyncpa [#allocation4], 1 }

</bundles_post_ra>
